<compile_context>
chip_gen: v5e
topology: v5e:2x2
jax: 0.10.0
libtpu: 0.0.40
codegen_flags: <defaults>
</compile_context>

<pallas_src>
import functools

import jax
import jax.numpy as jnp
from jax.experimental import pallas as pl
from jax.experimental.pallas import tpu as pltpu


def _sepconv_kernel(x_ref, wdw_ref, wpw_ref, bias_ref, out_ref,
                    *, H, Wp, ks, dilation):
    """One batch element per grid step.

    x_ref   : (1, Cin, Lp)    spatially padded input, flattened (H,W) on lanes
    wdw_ref : (Cin, ks*ks)    depthwise weights (f32, VPU path)
    wpw_ref : (Cout, Cin)     pointwise weights with BN scale folded in
    bias_ref: (Cout, 1)       BN shift folded through the pointwise weights
    out_ref : (1, Cout, H*Wp)
    """
    cin = x_ref.shape[1]
    hwp = H * Wp

    xf = x_ref[0].astype(jnp.float32)          # (Cin, Lp)
    wdw = wdw_ref[...]                         # (Cin, ks*ks)

    # ---- depthwise conv: 9 lane-shifted multiply-accumulates (f32, VPU) ----
    acc = jnp.zeros((cin, hwp), dtype=jnp.float32)
    for kh in range(ks):
        for kw in range(ks):
            off = (kh * Wp + kw) * dilation    # static lane offset
            tap = kh * ks + kw
            acc = acc + xf[:, off:off + hwp] * wdw[:, tap:tap + 1]

    # ---- pointwise 1x1 conv + folded BN: (Cout,Cin) @ (Cin,H*Wp) on MXU ----
    out = jnp.dot(wpw_ref[...], acc.astype(wpw_ref.dtype),
                  preferred_element_type=jnp.float32)
    out = out + bias_ref[...]                  # (Cout, 1) broadcast over lanes
    out_ref[0] = out.astype(out_ref.dtype)


def sep_conv_bn_relu(x_nchw, w_dw, w_pw, bn_gamma, bn_beta, bn_mean, bn_var,
                     *, ks=3, stride=1, dilation=1, eps=1e-5,
                     matmul_dtype=jnp.bfloat16):
    """Forward pass matching SepConvBNReLU.forward (stride=1 only).

    x_nchw: (N, Cin, H, W)   w_dw: (Cin, 1, ks, ks)   w_pw: (Cout, Cin, 1, 1)
    Returns (N, Cout, H, W) in NCHW.
    """
    assert stride == 1, "only stride=1 supported"  # TODO(synk): strided depthwise
    N, Cin, H, W = x_nchw.shape
    Cout = w_pw.shape[0]
    pad = dilation                      # module uses padding=dilation
    Hp, Wp = H + 2 * pad, W + 2 * pad
    hwp = H * Wp
    tail = (ks - 1) * dilation          # keeps the last tap's window in bounds
    Lp = Hp * Wp + tail

    # NCHW stays NCHW; pad spatially and flatten (H, W) onto the lane axis.
    # (single fused XLA pad+reshape -- no transposes anywhere in the wrapper)
    x_pad = jnp.pad(x_nchw, ((0, 0), (0, 0), (pad, pad), (pad, pad)))
    x_flat = jnp.pad(x_pad.reshape(N, Cin, Hp * Wp), ((0, 0), (0, 0), (0, tail)))

    # depthwise weights: (Cin, 1, ks, ks) -> (Cin, ks*ks)
    wdw = w_dw[:, 0, :, :].reshape(Cin, ks * ks).astype(jnp.float32)

    # fold inference BN into the pointwise weights + bias
    scale = bn_gamma / jnp.sqrt(bn_var + eps)                  # (Cin,)
    shift = bn_beta - bn_mean * scale                          # (Cin,)
    wpw = w_pw[:, :, 0, 0].astype(jnp.float32)                 # (Cout, Cin)
    wpw_fold = (wpw * scale[None, :]).astype(matmul_dtype)
    bias = (wpw @ shift).reshape(Cout, 1).astype(jnp.float32)

    kernel = functools.partial(_sepconv_kernel, H=H, Wp=Wp, ks=ks,
                               dilation=dilation)

    out_flat = pl.pallas_call(
        kernel,
        out_shape=jax.ShapeDtypeStruct((N, Cout, hwp), x_nchw.dtype),
        grid_spec=pltpu.PrefetchScalarGridSpec(
            num_scalar_prefetch=0,
            grid=(N,),
            in_specs=[
                pl.BlockSpec((1, Cin, Lp), lambda n: (n, 0, 0)),
                pl.BlockSpec((Cin, ks * ks), lambda n: (0, 0)),
                pl.BlockSpec((Cout, Cin), lambda n: (0, 0)),
                pl.BlockSpec((Cout, 1), lambda n: (0, 0)),
            ],
            out_specs=pl.BlockSpec((1, Cout, hwp), lambda n: (n, 0, 0)),
        ),
        compiler_params=pltpu.CompilerParams(
            dimension_semantics=("parallel",)),
    )(x_flat, wdw, wpw_fold, bias)

    # drop the Wp-W pad columns; result is already NCHW.
    return out_flat.reshape(N, Cout, H, Wp)[:, :, :, :W]


def _reference(x_nchw, w_dw, w_pw, bn_gamma, bn_beta, bn_mean, bn_var,
               *, dilation=1, eps=1e-5):
    """Pure-JAX f32 reference (lax conv) for correctness check."""
    Cin = x_nchw.shape[1]
    y = jax.lax.conv_general_dilated(
        x_nchw, w_dw, window_strides=(1, 1),
        padding=((dilation, dilation), (dilation, dilation)),
        rhs_dilation=(dilation, dilation), feature_group_count=Cin,
        dimension_numbers=("NCHW", "OIHW", "NCHW"))
    scale = (bn_gamma / jnp.sqrt(bn_var + eps)).reshape(1, Cin, 1, 1)
    shift = (bn_beta - bn_mean * bn_gamma / jnp.sqrt(bn_var + eps)).reshape(1, Cin, 1, 1)
    y = y * scale + shift
    y = jax.lax.conv_general_dilated(
        y, w_pw, window_strides=(1, 1), padding="VALID",
        dimension_numbers=("NCHW", "OIHW", "NCHW"))
    return y


if __name__ == "__main__":
    key = jax.random.PRNGKey(0)
    N, Cin, Cout, H, W = 2, 4, 8, 16, 16
    ks, dilation = 3, 1

    k1, k2, k3, k4, k5, k6, k7 = jax.random.split(key, 7)
    x = jax.random.normal(k1, (N, Cin, H, W), dtype=jnp.float32)

    # kaiming_normal_(a=1): gain = sqrt(2/(1+1^2)) = 1, std = 1/sqrt(fan_in)
    w_dw = jax.random.normal(k2, (Cin, 1, ks, ks), jnp.float32) / jnp.sqrt(ks * ks)
    w_pw = jax.random.normal(k3, (Cout, Cin, 1, 1), jnp.float32) / jnp.sqrt(Cin)

    # non-trivial BN params / running stats so the weight folding is exercised
    bn_gamma = 1.0 + 0.1 * jax.random.normal(k4, (Cin,), jnp.float32)
    bn_beta = 0.1 * jax.random.normal(k5, (Cin,), jnp.float32)
    bn_mean = 0.1 * jax.random.normal(k6, (Cin,), jnp.float32)
    bn_var = jax.random.uniform(k7, (Cin,), jnp.float32, minval=0.5, maxval=1.5)

    ref = _reference(x, w_dw, w_pw, bn_gamma, bn_beta, bn_mean, bn_var,
                     dilation=dilation)

    # strict check with f32 MXU operands
    out_f32 = sep_conv_bn_relu(x, w_dw, w_pw, bn_gamma, bn_beta, bn_mean, bn_var,
                               ks=ks, stride=1, dilation=dilation,
                               matmul_dtype=jnp.float32)
    out_f32 = jax.block_until_ready(out_f32)
    assert out_f32.shape == (N, Cout, H, W)
    assert jnp.allclose(out_f32, ref, atol=1e-4, rtol=1e-4)

    # default path: bf16 MXU operands (v6e/v7x fast path), bf16-level tolerance
    out_bf16 = sep_conv_bn_relu(x, w_dw, w_pw, bn_gamma, bn_beta, bn_mean, bn_var,
                                ks=ks, stride=1, dilation=dilation)
    out_bf16 = jax.block_until_ready(out_bf16)
    assert out_bf16.shape == (N, Cout, H, W)
    assert jnp.allclose(out_bf16, ref, atol=1e-1, rtol=1e-1)

    print("KERNEL_OK")
</pallas_src>

<mosaic_0001>
module attributes {stable_mosaic.version = 11 : i64} {
  func.func @_sepconv_kernel(%arg0: i32, %arg1: memref<1x4x326xf32, #tpu.memory_space<vmem>>, %arg2: memref<4x9xf32, #tpu.memory_space<vmem>>, %arg3: memref<8x4xf32, #tpu.memory_space<vmem>>, %arg4: memref<8x1xf32, #tpu.memory_space<vmem>>, %arg5: memref<1x8x288xf32, #tpu.memory_space<vmem>>) attributes {dimension_semantics = [#tpu.dimension_semantics<parallel>], iteration_bounds = array<i64: 2>, scalar_prefetch = 0 : i64, scratch_operands = 0 : i64, tpu.core_type = #tpu.core_type<tc>, window_params = [{transform_indices = @transform_0, window_bounds = array<i64: 1, 4, 326>}, {pipeline_mode = #tpu.pipeline_mode<synchronous>, transform_indices = @transform_1, window_bounds = array<i64: 4, 9>}, {pipeline_mode = #tpu.pipeline_mode<synchronous>, transform_indices = @transform_2, window_bounds = array<i64: 8, 4>}, {pipeline_mode = #tpu.pipeline_mode<synchronous>, transform_indices = @transform_3, window_bounds = array<i64: 8, 1>}, {transform_indices = @transform_4, window_bounds = array<i64: 1, 8, 288>}]} {
    %c0 = arith.constant 0 : index
    %c0_0 = arith.constant 0 : index
    %c0_1 = arith.constant 0 : index
    %0 = vector.load %arg1[%c0, %c0_0, %c0_1] : memref<1x4x326xf32, #tpu.memory_space<vmem>>, vector<1x4x326xf32>
    %1 = vector.shape_cast %0 : vector<1x4x326xf32> to vector<4x326xf32>
    %c0_2 = arith.constant 0 : index
    %c0_3 = arith.constant 0 : index
    %2 = vector.load %arg2[%c0_2, %c0_3] : memref<4x9xf32, #tpu.memory_space<vmem>>, vector<4x9xf32>
    %cst = arith.constant 0.000000e+00 : f32
    %3 = vector.broadcast %cst : f32 to vector<4x288xf32>
    %4 = vector.extract_strided_slice %1 {offsets = [0, 0], sizes = [4, 288], strides = [1, 1]} : vector<4x326xf32> to vector<4x288xf32>
    %5 = vector.extract_strided_slice %2 {offsets = [0, 0], sizes = [4, 1], strides = [1, 1]} : vector<4x9xf32> to vector<4x1xf32>
    %6 = vector.broadcast %5 : vector<4x1xf32> to vector<4x288xf32>
    %7 = arith.mulf %4, %6 : vector<4x288xf32>
    %8 = arith.addf %3, %7 : vector<4x288xf32>
    %9 = vector.extract_strided_slice %1 {offsets = [0, 1], sizes = [4, 288], strides = [1, 1]} : vector<4x326xf32> to vector<4x288xf32>
    %10 = vector.extract_strided_slice %2 {offsets = [0, 1], sizes = [4, 1], strides = [1, 1]} : vector<4x9xf32> to vector<4x1xf32>
    %11 = vector.broadcast %10 : vector<4x1xf32> to vector<4x288xf32>
    %12 = arith.mulf %9, %11 : vector<4x288xf32>
    %13 = arith.addf %8, %12 : vector<4x288xf32>
    %14 = vector.extract_strided_slice %1 {offsets = [0, 2], sizes = [4, 288], strides = [1, 1]} : vector<4x326xf32> to vector<4x288xf32>
    %15 = vector.extract_strided_slice %2 {offsets = [0, 2], sizes = [4, 1], strides = [1, 1]} : vector<4x9xf32> to vector<4x1xf32>
    %16 = vector.broadcast %15 : vector<4x1xf32> to vector<4x288xf32>
    %17 = arith.mulf %14, %16 : vector<4x288xf32>
    %18 = arith.addf %13, %17 : vector<4x288xf32>
    %19 = vector.extract_strided_slice %1 {offsets = [0, 18], sizes = [4, 288], strides = [1, 1]} : vector<4x326xf32> to vector<4x288xf32>
    %20 = vector.extract_strided_slice %2 {offsets = [0, 3], sizes = [4, 1], strides = [1, 1]} : vector<4x9xf32> to vector<4x1xf32>
    %21 = vector.broadcast %20 : vector<4x1xf32> to vector<4x288xf32>
    %22 = arith.mulf %19, %21 : vector<4x288xf32>
    %23 = arith.addf %18, %22 : vector<4x288xf32>
    %24 = vector.extract_strided_slice %1 {offsets = [0, 19], sizes = [4, 288], strides = [1, 1]} : vector<4x326xf32> to vector<4x288xf32>
    %25 = vector.extract_strided_slice %2 {offsets = [0, 4], sizes = [4, 1], strides = [1, 1]} : vector<4x9xf32> to vector<4x1xf32>
    %26 = vector.broadcast %25 : vector<4x1xf32> to vector<4x288xf32>
    %27 = arith.mulf %24, %26 : vector<4x288xf32>
    %28 = arith.addf %23, %27 : vector<4x288xf32>
    %29 = vector.extract_strided_slice %1 {offsets = [0, 20], sizes = [4, 288], strides = [1, 1]} : vector<4x326xf32> to vector<4x288xf32>
    %30 = vector.extract_strided_slice %2 {offsets = [0, 5], sizes = [4, 1], strides = [1, 1]} : vector<4x9xf32> to vector<4x1xf32>
    %31 = vector.broadcast %30 : vector<4x1xf32> to vector<4x288xf32>
    %32 = arith.mulf %29, %31 : vector<4x288xf32>
    %33 = arith.addf %28, %32 : vector<4x288xf32>
    %34 = vector.extract_strided_slice %1 {offsets = [0, 36], sizes = [4, 288], strides = [1, 1]} : vector<4x326xf32> to vector<4x288xf32>
    %35 = vector.extract_strided_slice %2 {offsets = [0, 6], sizes = [4, 1], strides = [1, 1]} : vector<4x9xf32> to vector<4x1xf32>
    %36 = vector.broadcast %35 : vector<4x1xf32> to vector<4x288xf32>
    %37 = arith.mulf %34, %36 : vector<4x288xf32>
    %38 = arith.addf %33, %37 : vector<4x288xf32>
    %39 = vector.extract_strided_slice %1 {offsets = [0, 37], sizes = [4, 288], strides = [1, 1]} : vector<4x326xf32> to vector<4x288xf32>
    %40 = vector.extract_strided_slice %2 {offsets = [0, 7], sizes = [4, 1], strides = [1, 1]} : vector<4x9xf32> to vector<4x1xf32>
    %41 = vector.broadcast %40 : vector<4x1xf32> to vector<4x288xf32>
    %42 = arith.mulf %39, %41 : vector<4x288xf32>
    %43 = arith.addf %38, %42 : vector<4x288xf32>
    %44 = vector.extract_strided_slice %1 {offsets = [0, 38], sizes = [4, 288], strides = [1, 1]} : vector<4x326xf32> to vector<4x288xf32>
    %45 = vector.extract_strided_slice %2 {offsets = [0, 8], sizes = [4, 1], strides = [1, 1]} : vector<4x9xf32> to vector<4x1xf32>
    %46 = vector.broadcast %45 : vector<4x1xf32> to vector<4x288xf32>
    %47 = arith.mulf %44, %46 : vector<4x288xf32>
    %48 = arith.addf %43, %47 : vector<4x288xf32>
    %c0_4 = arith.constant 0 : index
    %c0_5 = arith.constant 0 : index
    %49 = vector.load %arg3[%c0_4, %c0_5] : memref<8x4xf32, #tpu.memory_space<vmem>>, vector<8x4xf32>
    %cst_6 = arith.constant dense<0.000000e+00> : vector<8x288xf32>
    %50 = tpu.matmul %49, %48, %cst_6 {dimension_numbers = #tpu.dot_dimension_numbers<[1], [0], [0], [1], [0, 0, 1, 1], [], []>} : vector<8x4xf32>, vector<4x288xf32>, vector<8x288xf32> -> vector<8x288xf32>
    %c0_7 = arith.constant 0 : index
    %c0_8 = arith.constant 0 : index
    %51 = vector.load %arg4[%c0_7, %c0_8] : memref<8x1xf32, #tpu.memory_space<vmem>>, vector<8x1xf32>
    %52 = vector.broadcast %51 : vector<8x1xf32> to vector<8x288xf32>
    %53 = arith.addf %50, %52 : vector<8x288xf32>
    %c0_9 = arith.constant 0 : index
    %c0_10 = arith.constant 0 : index
    %c0_11 = arith.constant 0 : index
    %54 = vector.load %arg5[%c0_9, %c0_10, %c0_11] : memref<1x8x288xf32, #tpu.memory_space<vmem>>, vector<1x8x288xf32>
    %55 = vector.shape_cast %54 : vector<1x8x288xf32> to vector<8x288xf32>
    %56 = vector.shape_cast %53 : vector<8x288xf32> to vector<1x8x288xf32>
    tpu.vector_store %arg5[%c0_9, %c0_10, %c0_11], %56 {strides = array<i32>} : memref<1x8x288xf32, #tpu.memory_space<vmem>>, vector<1x8x288xf32>,
    return
  }
  func.func @transform_0(%arg0: i32) -> (i32, i32, i32) {
    %c0_i32 = arith.constant 0 : i32
    %c0_i32_0 = arith.constant 0 : i32
    %c0_i32_1 = arith.constant 0 : i32
    return %arg0, %c0_i32, %c0_i32_0 : i32, i32, i32
  }
  func.func @transform_1(%arg0: i32) -> (i32, i32) {
    %c0_i32 = arith.constant 0 : i32
    %c0_i32_0 = arith.constant 0 : i32
    %c0_i32_1 = arith.constant 0 : i32
    return %c0_i32, %c0_i32_0 : i32, i32
  }
  func.func @transform_2(%arg0: i32) -> (i32, i32) {
    %c0_i32 = arith.constant 0 : i32
    %c0_i32_0 = arith.constant 0 : i32
    %c0_i32_1 = arith.constant 0 : i32
    return %c0_i32, %c0_i32_0 : i32, i32
  }
  func.func @transform_3(%arg0: i32) -> (i32, i32) {
    %c0_i32 = arith.constant 0 : i32
    %c0_i32_0 = arith.constant 0 : i32
    %c0_i32_1 = arith.constant 0 : i32
    return %c0_i32, %c0_i32_0 : i32, i32
  }
  func.func @transform_4(%arg0: i32) -> (i32, i32, i32) {
    %c0_i32 = arith.constant 0 : i32
    %c0_i32_0 = arith.constant 0 : i32
    %c0_i32_1 = arith.constant 0 : i32
    return %arg0, %c0_i32, %c0_i32_0 : i32, i32, i32
  }
}

</mosaic_0001>

<bundles_post_ra>
// kernel: tpu_custom_call.1
= control target key start
LH: loop header
LB: loop body
LE: loop exit
PB: predicated region body
PF: predicated region fallthrough
CT: control target
= control target key end

     0   :  { %9 = vsyncpa [#allocation3], 0  ;;  %s1017_s0 = inlined_call_operand.hbm [shape: f32[2,4,326], index: 0, kind: input, shape index: {}]   ;;  %s1018_s1 = inlined_call_operand.vmem [shape: f32[4,9], index: 1, kind: input, shape index: {}]   ;;  %s1019_s2 = inlined_call_operand.vmem [shape: f32[8,4], index: 2, kind: input, shape index: {}]   ;;  %s1020_s3 = inlined_call_operand.vmem [shape: f32[8,1], index: 3, kind: input, shape index: {}]   ;;  %s1021_s4 = inlined_call_operand.hbm [shape: f32[2,8,288], index: 4, kind: output, shape index: {}]  }
   0x1   :  { %11 = vsyncpa [#allocation3 + $0x1], 0 }
   0x2   :  { %12 = vsyncpa [#allocation4], 0 }
   0x3   :  { %14 = vsyncpa [#allocation4 + $0x1], 0  ;;  %s842_s15 = smov 0   ;;  %s844_s16 = smov 0  }
   0x4   :  { %s846_s17 = smov 0   ;;  %s848_s18 = smov 0  }
   0x5 LB: > { %s863_s19 = sadd.s32 4294967295, %s797_s18   ;;  %s609_s20 = sadd.s32 4294967294, %s797_s18   ;;  %s797_s18 = sphi %s848_s18, %s1029_s18   ;;  %s793_s17 = sphi %s846_s17, %s1028_s17   ;;  %s789_s16 = sphi %s844_s16, %s1027_s16   ;;  %s785_s15 = sphi %s842_s15, %s1026_s15  }
   0x6   : > { %s867_s21 = sadd.s32 1, %s797_s18   ;;  %s27_s22 = sadd.s32 1, %s793_s17 }
   0x7   : > { %s24_s23 = ssub.s32 %s797_s18, %s867_s21  ;;  %p34_p0 = scmp.ne.s32.totalorder %s793_s17, %s789_s16 }
   0x8   : > { %p25_p1 = scmp.eq.s32.totalorder %s24_s23, 0  ;;  %p35_p2 = scmp.eq.s32.totalorder %s797_s18, 0 }
   0x9   : > { %p40_p3 = scmp.ne.s32.totalorder %s789_s16, %s785_s15  ;;  %p41_p4 = scmp.eq.s32.totalorder %s863_s19, 0 }
   0xa   : > { %s879_s24 = scalar_select %p25_p1, %s793_s17, %s27_s22  }
   0xb   : > { %p36_p5 = por %p35_p2, %p34_p0  ;;  %p881_p6 = por %p41_p4, %p40_p3 }
   0xc   : > { %p127_p7 = scmp.eq.s32.totalorder %s863_s19, 1  ;;  %p133_p8 = scmp.eq.s32.totalorder %s609_s20, 1 }
   0xd   : > { %p611_p9 = scmp.ge.s32.totalorder %s797_s18, 2  ;;  %p640_p10 = scmp.lt.s32.totalorder %s797_s18, 2 }
   0xe   : > { %p888_p11 = por %p127_p7, %p34_p0  ;;  %p892_p12 = por %p133_p8, %p40_p3 }
   0xf   : > { %s162_s28 = sand.u32 1, %s793_s17   ;;  %s624_s29 = smul.u32 12, %s797_s18 }
  0x10   : > { %s623_s30 = smul.u32 12, %s162_s28  ;;  %p901_p13 = pnand %p640_p10, %p36_p5 }
  0x11   : > { %s171_s7 = scalar_lea.hbm %s1017_s0, %s624_s29  ;;  %s163_s12 = scalar_lea.sflag [#allocation3], %s162_s28 }
  0x12   : > { %s173_s9 = sshll.u32 %s171_s7, 4  ;;  %s166_s10 = scalar_lea.vmem [#allocation2], %s623_s30  ;;  %s174_s9 = int_to_ptr.hbm [resolvable:$true] %s173_s9 }
  0x13   : > { %s175_s11 = sshll.u32 %s166_s10, 4  ;;  %s701_s13 = sshra.s32 %s174_s9, 4  ;;  %s176_s11 = int_to_ptr.vmem [resolvable:$true] %s175_s11  ;;  %s702_s13 = int_to_ptr.hbm [resolvable:$true] %s701_s13 }
  0x14   : > { %s703_s14 = scalar_lea.hbm %s702_s13, 12  ;;  %p705_p1 = pneg %p901_p13 }
  0x15   : > { %p704_p0 = scmp.ne.s32.totalorder %s702_s13, %s703_s14  ;;  %s708_s23 = scalar_lea.hbm %s1017_s0, 24 }
  0x16   : > { %p709_p4 = scmp.lt.s32.totalorder %s702_s13, %s1017_s0  ;;  %p710_p5 = scmp.lt.s32.totalorder %s708_s23, %s703_s14 }
  0x17   : > { %p706_p2 = pnand %p705_p1, %p704_p0 }
  0x18   : > { %p711_p7 = por %p710_p5, %p709_p4 }
  0x19   : > { %p707_p3 = pneg %p706_p2 }
  0x1b   : > { %p712_p8 = pnand %p711_p7, %p707_p3 }
  0x1d   : > { %715 = shalt.err (!%p712_p8)
}
  0x1e   : > { %635 = dma.hbm_to_vmem [thread:$0]  (!%p901_p13), %s174_s9, 192, %s176_s11, %s163_s12  }
  0x1f   : > { %p613_p10 = scmp.ge.s32.totalorder %s797_s18, 1  ;;  %p180_p0 = scmp.lt.s32.totalorder %s797_s18, 3 }
  0x21   : > { %p181_p1 = pnand %p613_p10, %p180_p0 }
  0x22   : > { %s918_s28 = sand.u32 (!%p181_p1), 1, %s789_s16  }
  0x23   : > { %184 = sbr.rel (%p181_p1) target bundleno = 467 (0x1d3), region = 36  ;;  %s187_s6 = scalar_lea.sflag (!%p181_p1), [#allocation3], %s918_s28 }
  0x24   : > { %s625_s30 = smul.u32 (!%p181_p1), 12, %s918_s28 }
  0x26   : > { %s922_s7 = scalar_lea.vmem (!%p181_p1), [#allocation2], %s625_s30 }
  0x28   : > { %776 = dma.done.wait (%p881_p6), %s187_s6, 192  }
  0x29   : > { %778 = vsyncadd (%p881_p6), %s187_s6, 4294967104  ;;  %v799_v0 = vmov 3   ;;  %v800_v1 = vmov 1   ;;  %v801_v2 = vmov 5   ;;  %v218_v3 = vld [vmem:[%s1018_s1] sm:$0xf] }
  0x2a   : > { %694 = vset.pattern.permute.xlu1 %v799_v0  ;;  %692 = vset.pattern.permute.xlu0 %v800_v1  ;;  %v802_v4 = vmov 4   ;;  %v803_v5 = vmov 2   ;;  %v804_v6 = vmov 6   ;;  %v805_v7 = vmov 7   ;;  %v934_v14 = vld [vmem:[%s922_s7] sm:$0xff]  ;;  %s809_s25 = smov 127  }
  0x2b   : > { %696 = vset.pattern.permute.xlu2 %v801_v2  ;;  %284 = vperm.xlu1 %694, %v218_v3   ;;  %v806_v8 = vmov 0   ;;  %v807_v9 = vmov 8   ;;  %v808_v10 = vmov 839922192   ;;  %v937_v15 = vld [vmem:[%s922_s7 + $0x8] sm:$0xf] }
  0x2c   : > { %233 = vperm.xlu0 %692, %v218_v3   ;;  %334 = vperm.xlu2 %696, %v218_v3   ;;  %v224_v11 = vunpack.c.l.s4 %v808_v10  ;;  %s810_s10 = smov 110   ;;  %s811_s11 = smov 126   ;;  %v434_v43 = vld [vmem:[%s1020_s3] sm:$0xff]  ;;  %vm250_vm0 = vcmask 1043456   ;;  %vm252_vm1 = vcmask 1039360   ;;  %vm277_vm2 = vcmask 1031168  }
  0x2d   : > { %s812_s12 = smov 109   ;;  %s813_s13 = smov 92   ;;  %vm302_vm3 = vcmask 900096   ;;  %vm327_vm4 = vcmask 891904   ;;  %vm352_vm5 = vcmask 883712   ;;  %vm377_vm6 = vcmask 752640  }
  0x2e   : > { %v931_v12 = vunpack.c.0.s8 %v224_v11  ;;  %s814_s14 = smov 91   ;;  %s815_s20 = smov 108   ;;  %vm402_vm7 = vcmask 744448   ;;  %vm427_vm8 = vcmask 736256   ;;  %vm448_vm9 = vcmask 31744  }
  0x2f   : > { %s816_s29 = smov 90   ;;  %s626_s6 = smul.u32 24, %s918_s28  ;;  %vm520_vm10 = vcmask 261120  }
  0x30   : > { %s627_s7 = smul.u32 24, %s863_s19  ;;  %s523_s19 = scalar_lea.sflag [#allocation4], %s918_s28 }
  0x31   : > { %s751_s23 = scalar_lea.hbm %s1021_s4, 48 }
  0x33   : > { %695 = vset.pattern.permute.xlu1 %v802_v4 }
  0x34   : > { %693 = vset.pattern.permute.xlu0 %v803_v5  ;;  %309 = vperm.xlu1 %695, %v218_v3  }
  0x35   : > { %259 = vperm.xlu0 %693, %v218_v3   ;;  %697 = vset.pattern.permute.xlu2 %v804_v6 }
  0x36   : > { %359 = vperm.xlu2 %697, %v218_v3  }
  0x3c   : > { %698 = vset.pattern.permute.xlu1 %v805_v7 }
  0x3d   : > { %700 = vset.pattern.permute.xlu0 %v806_v8  ;;  %384 = vperm.xlu1 %698, %v218_v3  }
  0x3e   : > { %221 = vperm.xlu0 %700, %v218_v3   ;;  %699 = vset.pattern.permute.xlu2 %v807_v9 }
  0x3f   : > { %409 = vperm.xlu2 %699, %v218_v3  }
  0x86   : > { %v335_v19 = vpop.permute.xlu2 %334 }
  0x87   : > { %v339_v37 = vperm.slane %v335_v19, %v931_v12 }
  0x89   : > { %v342_v39 = vmul.f32 %v339_v37, %v937_v15  ;;  %v341_v40 = vmul.f32 %v339_v37, %v934_v14 }
  0x90   : > { %v360_v27 = vpop.permute.xlu2 %359 }
  0x91   : > { %v364_v31 = vperm.slane %v360_v27, %v931_v12 }
  0x93   : > { %v367_v33 = vmul.f32 %v364_v31, %v937_v15  ;;  %v366_v41 = vmul.f32 %v364_v31, %v934_v14 }
  0x99   : > { %v410_v44 = vpop.permute.xlu2 %409 }
  0x9a   : > { %v414_v45 = vperm.slane %v410_v44, %v931_v12 }
  0x9c   : > { %v417_v46 = vmul.f32 %v414_v45, %v937_v15  ;;  %v416_v47 = vmul.f32 %v414_v45, %v934_v14 }
  0x9d   : > { %v285_v16 = vpop.permute.xlu1 %284 }
  0x9e   : > { %v234_v13 = vpop.permute.xlu0 %233  ;;  %v289_v18 = vperm.slane %v285_v16, %v931_v12 }
  0x9f   : > { %v238_v17 = vperm.slane %v234_v13, %v931_v12 }
  0xa0   : > { %v292_v22 = vmul.f32 %v289_v18, %v937_v15  ;;  %v291_v32 = vmul.f32 %v289_v18, %v934_v14 }
  0xa1   : > { %v240_v20 = vmul.f32 %v238_v17, %v934_v14  ;;  %v241_v21 = vmul.f32 %v238_v17, %v937_v15 }
  0xa2   : > { %297 = vrot.lane.b32.xlu0 %v292_v22, %s810_s10 }
  0xa3   : > { %246 = vrot.lane.b32.xlu1 %v241_v21, %s809_s25  ;;  %244 = vrot.lane.b32.xlu2 %v240_v20, %s809_s25  ;;  %s534_s25 = scalar_lea.hbm %s1021_s4, %s627_s7 }
  0xa6   : > { %v310_v23 = vpop.permute.xlu1 %309 }
  0xa7   : > { %v260_v24 = vpop.permute.xlu0 %259  ;;  %v314_v25 = vperm.slane %v310_v23, %v931_v12 }
  0xa8   : > { %v264_v26 = vperm.slane %v260_v24, %v931_v12 }
  0xa9   : > { %v316_v28 = vmul.f32 %v314_v25, %v934_v14  ;;  %v317_v34 = vmul.f32 %v314_v25, %v937_v15 }
  0xaa   : > { %v266_v29 = vmul.f32 %v264_v26, %v934_v14  ;;  %v267_v30 = vmul.f32 %v264_v26, %v937_v15 }
  0xab   : > { %320 = vrot.lane.b32.xlu0 %v316_v28, %s812_s12 }
  0xac   : > { %272 = vrot.lane.b32.xlu1 %v267_v30, %s811_s11  ;;  %270 = vrot.lane.b32.xlu2 %v266_v29, %s811_s11 }
  0xaf   : > { %v385_v35 = vpop.permute.xlu1 %384 }
  0xb0   : > { %v389_v36 = vperm.slane %v385_v35, %v931_v12  ;;  %v222_v49 = vpop.permute.xlu0 %221 }
  0xb1   : > { %v226_v55 = vperm.slane %v222_v49, %v931_v12 }
  0xb2   : > { %v391_v38 = vmul.f32 %v389_v36, %v934_v14  ;;  %v392_v42 = vmul.f32 %v389_v36, %v937_v15 }
  0xb3   : > { %372 = vrot.lane.b32.xlu0 %v367_v33, %s813_s13  ;;  %v229_v57 = vmul.f32 %v226_v55, %v937_v15  ;;  %v228_v6 = vmul.f32 %v226_v55, %v934_v14 }
  0xb4   : > { %295 = vrot.lane.b32.xlu1 %v291_v32, %s810_s10  ;;  %322 = vrot.lane.b32.xlu2 %v317_v34, %s812_s12  ;;  %s215_s10 = scalar_lea.vmem [#allocation5], %s626_s6  ;;  %s538_s12 = sshll.u32 %s534_s25, 4  ;;  %s539_s12 = int_to_ptr.hbm [resolvable:$true] %s538_s12 }
  0xb5   : > { %s536_s11 = sshll.u32 %s215_s10, 4  ;;  %s537_s11 = int_to_ptr.vmem [resolvable:$true] %s536_s11 }
  0xbb   : > { %395 = vrot.lane.b32.xlu0 %v391_v38, %s814_s14 }
  0xbc   : > { %347 = vrot.lane.b32.xlu1 %v342_v39, %s815_s20  ;;  %345 = vrot.lane.b32.xlu2 %v341_v40, %s815_s20 }
  0xc3   : > { %437 = vperm.xlu0 %700, %v434_v43  }
  0xc4   : > { %370 = vrot.lane.b32.xlu1 %v366_v41, %s813_s13  ;;  %397 = vrot.lane.b32.xlu2 %v392_v42, %s814_s14  ;;  %s745_s13 = sshra.s32 %s539_s12, 4  ;;  %s746_s13 = int_to_ptr.hbm [resolvable:$true] %s745_s13 }
  0xc5   : > { %s747_s14 = scalar_lea.hbm %s746_s13, 24  ;;  %p752_p3 = scmp.lt.s32.totalorder %s746_s13, %s1021_s4 }
  0xc6   : > { %p748_p6 = scmp.ne.s32.totalorder %s746_s13, %s747_s14  ;;  %p753_p4 = scmp.lt.s32.totalorder %s751_s23, %s747_s14 }
  0xc8   : > { %p749_p13 = pnand %p748_p6, %p888_p11  ;;  %p754_p5 = por %p753_p4, %p752_p3 }
  0xca   : > { %p750_p2 = pneg %p749_p13 }
  0xcc   : > { %422 = vrot.lane.b32.xlu1 %v417_v46, %s816_s29  ;;  %420 = vrot.lane.b32.xlu2 %v416_v47, %s816_s29  ;;  %p755_p7 = pnand %p754_p5, %p750_p2 }
  0xfd   : > { %v245_v48 = vpop.permute.xlu2 %244 }
  0xfe   : > { %v248_v61 = vrot.slane %v245_v48, 4 }
 0x106   : > { %v271_v50 = vpop.permute.xlu2 %270 }
 0x107   : > { %v274_v0 = vrot.slane %v271_v50, 4 }
 0x10e   : > { %v323_v53 = vpop.permute.xlu2 %322 }
 0x10f   : > { %v325_v17 = vrot.slane %v323_v53, 4 }
 0x114   : > { %v298_v52 = vpop.permute.xlu0 %297 }
 0x115   : > { %v247_v51 = vpop.permute.xlu1 %246  ;;  %v300_v2 = vrot.slane %v298_v52, 4 }
 0x116   : > { %v249_v59 = vrot.slane %v247_v51, 4  ;;  %v346_v60 = vpop.permute.xlu2 %345  ;;  %v257_v62 = vadd.f32 %v247_v51, %v229_v57 }
 0x117   : > { %v349_v20 = vrot.slane %v346_v60, 4 }
 0x118   : > { %v251_v1 = vsel %vm250_vm0, %v248_v61, %v249_v59 }
 0x119   : > { %v253_v8 = vsel %vm252_vm1, %v245_v48, %v251_v1 }
 0x11a   : > { %v256_v15 = vadd.f32 %v253_v8, %v228_v6 }
 0x11d   : > { %v321_v56 = vpop.permute.xlu0 %320 }
 0x11e   : > { %v273_v54 = vpop.permute.xlu1 %272  ;;  %v324_v12 = vrot.slane %v321_v56, 4  ;;  %v398_v18 = vpop.permute.xlu2 %397 }
 0x11f   : > { %v275_v63 = vrot.slane %v273_v54, 4  ;;  %v282_v3 = vadd.f32 %v273_v54, %v257_v62  ;;  %v400_v37 = vrot.slane %v398_v18, 4 }
 0x120   : > { %v326_v14 = vsel %vm250_vm0, %v324_v12, %v325_v17 }
 0x121   : > { %v276_v7 = vsel %vm250_vm0, %v274_v0, %v275_v63  ;;  %v307_v10 = vadd.f32 %v298_v52, %v282_v3  ;;  %v328_v30 = vsel %vm327_vm4, %v321_v56, %v326_v14  ;;  %v433_v52 = vld [vmem:[%s1019_s2] sm:$0xff] }
 0x122   : > { %v278_v13 = vsel %vm277_vm2, %v271_v50, %v276_v7 }
 0x123   : > { %v281_v21 = vadd.f32 %v278_v13, %v256_v15  ;;  %v332_v22 = vadd.f32 %v323_v53, %v307_v10 }
 0x125   : > { %v373_v5 = vpop.permute.xlu0 %372 }
 0x126   : > { %v296_v58 = vpop.permute.xlu1 %295  ;;  %v375_v23 = vrot.slane %v373_v5, 4  ;;  %v421_v39 = vpop.permute.xlu2 %420 }
 0x127   : > { %v299_v4 = vrot.slane %v296_v58, 4  ;;  %v424_v44 = vrot.slane %v421_v39, 4 }
 0x129   : > { %v301_v11 = vsel %vm250_vm0, %v299_v4, %v300_v2 }
 0x12a   : > { %v303_v19 = vsel %vm302_vm3, %v296_v58, %v301_v11 }
 0x12b   : > { %v306_v24 = vadd.f32 %v303_v19, %v281_v21 }
 0x12d   : > { %v396_v27 = vpop.permute.xlu0 %395  ;;  %v331_v32 = vadd.f32 %v328_v30, %v306_v24 }
 0x12e   : > { %v348_v9 = vpop.permute.xlu1 %347  ;;  %v399_v33 = vrot.slane %v396_v27, 4 }
 0x12f   : > { %v350_v16 = vrot.slane %v348_v9, 4  ;;  %v357_v26 = vadd.f32 %v348_v9, %v332_v22 }
 0x130   : > { %v401_v40 = vsel %vm250_vm0, %v399_v33, %v400_v37 }
 0x131   : > { %v351_v25 = vsel %vm250_vm0, %v349_v20, %v350_v16  ;;  %v382_v34 = vadd.f32 %v373_v5, %v357_v26  ;;  %v403_v47 = vsel %vm402_vm7, %v396_v27, %v401_v40 }
 0x132   : > { %v353_v31 = vsel %vm352_vm5, %v346_v60, %v351_v25 }
 0x133   : > { %v356_v38 = vadd.f32 %v353_v31, %v331_v32  ;;  %v407_v42 = vadd.f32 %v398_v18, %v382_v34 }
 0x135   : > { %v438_v56 = vpop.permute.xlu0 %437 }
 0x136   : > { %v371_v28 = vpop.permute.xlu1 %370 }
 0x137   : > { %v374_v29 = vrot.slane %v371_v28, 4 }
 0x139   : > { %v376_v35 = vsel %vm250_vm0, %v374_v29, %v375_v23 }
 0x13a   : > { %v378_v36 = vsel %vm377_vm6, %v371_v28, %v376_v35 }
 0x13b   : > { %v381_v41 = vadd.f32 %v378_v36, %v356_v38 }
 0x13d   : > { %v406_v48 = vadd.f32 %v403_v47, %v381_v41 }
 0x13e   : > { %v423_v43 = vpop.permute.xlu1 %422 }
 0x13f   : > { %v425_v45 = vrot.slane %v423_v43, 4  ;;  %v432_v46 = vadd.f32 %v423_v43, %v407_v42 }
 0x141   : > { %v426_v49 = vsel %vm250_vm0, %v424_v44, %v425_v45  ;;  %444 = vst [vmem:[#allocation1 + $0x10] ss:$2 sm:$0xff] %v432_v46 }
 0x142   : > { %v428_v50 = vsel %vm427_vm8, %v421_v39, %v426_v49 }
 0x143   : > { %v431_v51 = vadd.f32 %v428_v50, %v406_v48 }
 0x145   : > { %442 = vst [vmem:[#allocation1] ss:$2 sm:$0xff] %v431_v51 }
 0x148   : > { %v447_v53 = vld.sshfl [vmem:[#allocation1 + $0x10] sm:$0xff pattern:$0x75316420] }
 0x149   : > { %618 = vmatpush.msk.msra.mxu2 %vm250_vm0, %v447_v53 }
 0x14a   : > { %619 = vmatmul.msk.f32.vlgmr.msra.gmra.mxu2 %vm448_vm9, %v433_v52 }
 0x14c   : > { %v445_v54 = vld.sshfl [vmem:[#allocation1] sm:$0xff pattern:$0x75316420]  ;;  %v446_v55 = vld.sshfl [vmem:[#allocation1 + $0x8] sm:$0xff pattern:$0x75316420] }
 0x14d   : > { %614 = vmatpush.msk.msra.mxu0 %vm250_vm0, %v445_v54  ;;  %616 = vmatpush.msk.msra.mxu1 %vm250_vm0, %v446_v55 }
 0x14e   : > { %615 = vmatmul.msk.f32.vlgmr.msra.gmra.mxu0 %vm448_vm9, %v433_v52  ;;  %617 = vmatmul.msk.f32.vlgmr.msra.gmra.mxu1 %vm448_vm9, %v433_v52 }
 0x1cb   : > { %v475_v57 = vpop.f32.mrf.mxu0  ;;  %v495_v58 = vpop.f32.mrf.mxu1 }
 0x1cc   : > { %v476_v59 = vadd.f32 %v475_v57, %v438_v56  ;;  %v496_v60 = vadd.f32 %v495_v58, %v438_v56 }
 0x1cd   : > { %v515_v61 = vpop.f32.mrf.mxu2 }
 0x1ce   : > { %518 = vst [vmem:[%s215_s10] sm:$0xff] %v476_v59  ;;  %v516_v62 = vadd.f32 %v515_v61, %v438_v56 }
 0x1cf   : > { %519 = vst [vmem:[%s215_s10 + $0x8] sm:$0xff] %v496_v60 }
 0x1d0   : > { %521 = vst.msk [vmem:[%s215_s10 + $0x10] sm:$0xff] %vm520_vm10, %v516_v62 }
 0x1d1   : > { %758 = shalt.err (!%p755_p7)
}
 0x1d2   : > { %630 = dma.vmem_to_hbm [thread:$0]  (%p888_p11), %s537_s11, 384, %s539_s12, %s523_s19  }
 0x1d3 PF: > { %s550_s28 = sand.u32 1, %s785_s15   ;;  %p637_p8 = pnand %p611_p9, %p892_p12 }
 0x1d4   : > { %s551_s30 = scalar_lea.sflag [#allocation4], %s550_s28 }
 0x1d5   : > { %p638_p10 = pneg %p637_p8 }
 0x1d7   : > { %780 = dma.done.wait (%p638_p10), %s551_s30, 384  }
 0x1d8   : > { %782 = vsyncadd (%p638_p10), %s551_s30, 4294966912  ;;  %p17_p0 = scmp.ge.s32.totalorder %s867_s21, 4   ;;  %s1026_s15 = smov %s789_s16 }
 0x1d9   : > { %s1027_s16 = smov %s793_s17  ;;  %s1028_s17 = smov %s879_s24 }
 0x1da   : > { %s1029_s18 = smov %s867_s21  ;;  %19 = sbr.rel (!%p17_p0) target bundleno = 5 (0x5), region = 82 }
 0x1df   :  { %557 = vsyncpa [#allocation3], 1 }
 0x1e0   :  { %559 = vsyncpa [#allocation3 + $0x1], 1 }
 0x1e1   :  { %560 = vsyncpa [#allocation4], 1 }
 0x1e2   :  { %562 = vsyncpa [#allocation4 + $0x1], 1 }

</bundles_post_ra>
